<compile_context>
chip_gen: v7x
topology: tpu7x:2x2x1
jax: 0.10.0
libtpu: 0.0.40
codegen_flags: <defaults>
</compile_context>

<pallas_src>
import functools
import math

import jax
import jax.numpy as jnp
from jax import lax
from jax.experimental import pallas as pl
from jax.experimental.pallas import tpu as pltpu


def _bert_attention_kernel(x_ref, wqkv_ref, bqkv_ref, o_ref, *, hidden):
    x = x_ref[...]                                   # [S, D] f32

    # Fused QKV projection: x @ Wqkv^T + bqkv, Wqkv in PyTorch layout [3D, D].
    # Contracting the last axis of both operands is native on the MXU, so no
    # transpose (wrapper- or kernel-side) is needed.
    qkv = lax.dot_general(
        x, wqkv_ref[...],
        dimension_numbers=(((1,), (1,)), ((), ())),
        preferred_element_type=jnp.float32) + bqkv_ref[...]      # [S, 3D]

    q = qkv[:, :hidden]              # already carries the 1/sqrt(D) scale
    k = qkv[:, hidden:2 * hidden]
    v = qkv[:, 2 * hidden:]

    # scores = Q^T @ K: contract over the S axis directly on the MXU
    # (no XLU transpose of Q).
    scores = lax.dot_general(
        q, k,
        dimension_numbers=(((0,), (0,)), ((), ())),
        preferred_element_type=jnp.float32)                      # [D, D]

    # Numerically stable softmax over the last dim; denominator reciprocal on
    # the EUP (approx=True), which is otherwise idle here.
    m = jnp.max(scores, axis=-1, keepdims=True)
    e = jnp.exp(scores - m)
    attn = e * pl.reciprocal(jnp.sum(e, axis=-1, keepdims=True), approx=True)

    # out = V @ attn  -> [S, D]
    out = jnp.dot(v, attn, preferred_element_type=jnp.float32)
    o_ref[...] = out.astype(o_ref.dtype)


def bert_attention(x, wq, bq, wk, bk, wv, bv):
    """x: [S, D]; wq/wk/wv: PyTorch-style [D_out, D_in]; bq/bk/bv: [D]."""
    S, D = x.shape
    scale = jnp.float32(1.0 / math.sqrt(D))

    # Fold the 1/sqrt(D) scale into the query projection (zero in-kernel cost)
    # and fuse Q|K|V into one wide operand.  Weights stay in PyTorch layout
    # ([D_out, D_in]) -- no transposes, no extra HBM round trips for .T ops.
    wqkv = jnp.concatenate([wq * scale, wk, wv], axis=0)          # [3D, D]
    bqkv = jnp.concatenate([bq * scale, bk, bv]).reshape(1, 3 * D)

    full = lambda shape: pl.BlockSpec(shape, lambda: (0,) * len(shape))

    # VMEM budget derived from the actual working set (inputs/outputs assumed
    # double-buffered, plus intermediates), with generous headroom; stays far
    # under the 64 MiB ceiling on v7x.
    work_bytes = 4 * (
        2 * S * D            # x tile
        + 3 * D * D + 3 * D  # fused weights + bias (resident)
        + S * 3 * D          # qkv intermediate
        + 2 * D * D          # scores + attn
        + 2 * S * D          # out tile
    )
    vmem_limit = min(max(8 * work_bytes, 1 << 20), 64 << 20)

    # Advisory cost hint for the XLA scheduler around the custom call.
    cost = pl.CostEstimate(
        flops=2 * S * D * (3 * D) + 2 * S * D * D + 2 * S * D * D,
        transcendentals=D * D + D,
        bytes_accessed=4 * (S * D + 3 * D * D + 3 * D + S * D),
    )

    kernel = functools.partial(_bert_attention_kernel, hidden=D)
    return pl.pallas_call(
        kernel,
        out_shape=jax.ShapeDtypeStruct((S, D), x.dtype),
        in_specs=[
            full((S, D)),          # x
            full((3 * D, D)),      # fused Wqkv (PyTorch layout)
            full((1, 3 * D)),      # fused bias
        ],
        out_specs=full((S, D)),
        compiler_params=pltpu.CompilerParams(vmem_limit_bytes=vmem_limit),
        cost_estimate=cost,
    )(x, wqkv, bqkv)


def _reference(x, wq, bq, wk, bk, wv, bv):
    D = x.shape[-1]
    q = x @ wq.T + bq
    k = x @ wk.T + bk
    v = x @ wv.T + bv
    scores = (q.T @ k) / math.sqrt(D)
    attn = jax.nn.softmax(scores, axis=-1)
    return v @ attn


if __name__ == "__main__":
    S, D = 8, 32  # seq=8, hidden=32
    key = jax.random.PRNGKey(0)
    kx, kq, kbq, kk, kbk, kv, kbv = jax.random.split(key, 7)

    stdv = 1.0 / math.sqrt(D)
    x = jax.random.normal(kx, (S, D), dtype=jnp.float32)
    wq = jax.random.uniform(kq, (D, D), jnp.float32, -stdv, stdv)
    bq = jax.random.uniform(kbq, (D,), jnp.float32, -stdv, stdv)
    wk = jax.random.uniform(kk, (D, D), jnp.float32, -stdv, stdv)
    bk = jax.random.uniform(kbk, (D,), jnp.float32, -stdv, stdv)
    wv = jax.random.uniform(kv, (D, D), jnp.float32, -stdv, stdv)
    bv = jax.random.uniform(kbv, (D,), jnp.float32, -stdv, stdv)

    out = bert_attention(x, wq, bq, wk, bk, wv, bv)
    jax.block_until_ready(out)

    ref = _reference(x, wq, bq, wk, bk, wv, bv)
    assert out.shape == (S, D)
    # Tolerance accommodates the EUP approximate reciprocal in the softmax
    # normalizer.
    assert jnp.allclose(out, ref, atol=2e-3, rtol=2e-3), "mismatch vs reference"
    print("KERNEL_OK")
</pallas_src>

<mosaic_0001>
module attributes {stable_mosaic.version = 11 : i64} {
  func.func @_bert_attention_kernel(%arg0: memref<8x32xf32, #tpu.memory_space<vmem>>, %arg1: memref<96x32xf32, #tpu.memory_space<vmem>>, %arg2: memref<1x96xf32, #tpu.memory_space<vmem>>, %arg3: memref<8x32xf32, #tpu.memory_space<vmem>>) attributes {dimension_semantics = [], scalar_prefetch = 0 : i64, scratch_operands = 0 : i64, tpu.core_type = #tpu.core_type<tc>} {
    %c0 = arith.constant 0 : index
    %c0_0 = arith.constant 0 : index
    %0 = vector.load %arg0[%c0, %c0_0] : memref<8x32xf32, #tpu.memory_space<vmem>>, vector<8x32xf32>
    %c0_1 = arith.constant 0 : index
    %c0_2 = arith.constant 0 : index
    %1 = vector.load %arg1[%c0_1, %c0_2] : memref<96x32xf32, #tpu.memory_space<vmem>>, vector<96x32xf32>
    %cst = arith.constant dense<0.000000e+00> : vector<8x96xf32>
    %2 = tpu.matmul %0, %1, %cst {dimension_numbers = #tpu.dot_dimension_numbers<[1], [1], [0], [0], [0, 0, 1, 0], [], []>} : vector<8x32xf32>, vector<96x32xf32>, vector<8x96xf32> -> vector<8x96xf32>
    %c0_3 = arith.constant 0 : index
    %c0_4 = arith.constant 0 : index
    %3 = vector.load %arg2[%c0_3, %c0_4] : memref<1x96xf32, #tpu.memory_space<vmem>>, vector<1x96xf32>
    %4 = vector.broadcast %3 : vector<1x96xf32> to vector<8x96xf32>
    %5 = arith.addf %2, %4 : vector<8x96xf32>
    %6 = vector.extract_strided_slice %5 {offsets = [0, 0], sizes = [8, 32], strides = [1, 1]} : vector<8x96xf32> to vector<8x32xf32>
    %7 = vector.extract_strided_slice %5 {offsets = [0, 32], sizes = [8, 32], strides = [1, 1]} : vector<8x96xf32> to vector<8x32xf32>
    %8 = vector.extract_strided_slice %5 {offsets = [0, 64], sizes = [8, 32], strides = [1, 1]} : vector<8x96xf32> to vector<8x32xf32>
    %cst_5 = arith.constant dense<0.000000e+00> : vector<32x32xf32>
    %9 = tpu.matmul %6, %7, %cst_5 {dimension_numbers = #tpu.dot_dimension_numbers<[0], [0], [1], [1], [0, 1, 1, 1], [], []>} : vector<8x32xf32>, vector<8x32xf32>, vector<32x32xf32> -> vector<32x32xf32>
    %cst_6 = arith.constant dense<0xFF800000> : vector<32xf32>
    %10 = vector.multi_reduction <maximumf>, %9, %cst_6 [1] : vector<32x32xf32> to vector<32xf32>
    %11 = vector.shape_cast %10 : vector<32xf32> to vector<32x1xf32>
    %12 = vector.broadcast %11 : vector<32x1xf32> to vector<32x32xf32>
    %13 = arith.subf %9, %12 : vector<32x32xf32>
    %14 = math.exp %13 : vector<32x32xf32>
    %cst_7 = arith.constant dense<0.000000e+00> : vector<32xf32>
    %15 = vector.multi_reduction <add>, %14, %cst_7 [1] : vector<32x32xf32> to vector<32xf32>
    %16 = vector.shape_cast %15 : vector<32xf32> to vector<32x1xf32>
    %17 = tpu.reciprocal %16 {approx = true} : vector<32x1xf32> -> vector<32x1xf32>
    %18 = vector.broadcast %17 : vector<32x1xf32> to vector<32x32xf32>
    %19 = arith.mulf %14, %18 : vector<32x32xf32>
    %cst_8 = arith.constant dense<0.000000e+00> : vector<8x32xf32>
    %20 = tpu.matmul %8, %19, %cst_8 {dimension_numbers = #tpu.dot_dimension_numbers<[1], [0], [0], [1], [0, 0, 1, 1], [], []>} : vector<8x32xf32>, vector<32x32xf32>, vector<8x32xf32> -> vector<8x32xf32>
    %c0_9 = arith.constant 0 : index
    %c0_10 = arith.constant 0 : index
    %21 = vector.load %arg3[%c0_9, %c0_10] : memref<8x32xf32, #tpu.memory_space<vmem>>, vector<8x32xf32>
    tpu.vector_store %arg3[%c0_9, %c0_10], %20 {strides = array<i32>} : memref<8x32xf32, #tpu.memory_space<vmem>>, vector<8x32xf32>,
    return
  }
}

</mosaic_0001>

<bundles_post_ra>
// kernel: tpu_custom_call.1
= control target key start
LH: loop header
LB: loop body
LE: loop exit
PB: predicated region body
PF: predicated region fallthrough
CT: control target
= control target key end

     0   :  { %vm35_vm0 = vcmask 261120   ;;  %v576_v2 = vmov 0.0|0.0   ;;  %vm577_vm2 = vmmov 0   ;;  %v578_v5 = vmov 0.0   ;;  %s695_s0 = inlined_call_operand.vmem [shape: f32[8,32], index: 0, kind: input, shape index: {}]   ;;  %s696_s1 = inlined_call_operand.vmem [shape: f32[96,32], index: 1, kind: input, shape index: {}]   ;;  %s697_s2 = inlined_call_operand.vmem [shape: f32[1,96], index: 2, kind: input, shape index: {}]   ;;  %s698_s3 = inlined_call_operand.hbm [shape: f32[8,32], index: 3, kind: output, shape index: {}]  }
   0x1   :  { %v16_v0 = vld [vmem:[%s696_s1] sm:$0xff]  ;;  %v17_v1 = vld [vmem:[%s696_s1 + $0x8] sm:$0xff]  ;;  %500 = vmatprep.subr.bf16.mxu0 %v576_v2  ;;  %vm611_vm1 = vmpackc.low %vm35_vm0, %vm35_vm0  ;;  %478 = vmatprep.mubr.msk.f32.mxu0 %vm577_vm2, %v578_v5 }
   0x2   :  { %v501_v3 = vpack.c.bf16 %v17_v1, %v16_v0  ;;  %v18_v6 = vld [vmem:[%s696_s1 + $0x10] sm:$0xff]  ;;  %v19_v7 = vld [vmem:[%s696_s1 + $0x18] sm:$0xff] }
   0x4   :  { %503 = vmatpush3.bf16.xpose.msk.msra.mxu0 %vm611_vm1, %v501_v3 }
   0x5   :  { %504 = vmatprep.subr.bf16.mxu0 %v576_v2 }
   0x6   :  { %8 = vsyncpa [#allocation3], 0  ;;  %v505_v8 = vpack.c.bf16 %v19_v7, %v18_v6  ;;  %v20_v9 = vld [vmem:[%s696_s1 + $0x20] sm:$0xff]  ;;  %v21_v10 = vld [vmem:[%s696_s1 + $0x28] sm:$0xff]  ;;  %s579_s13 = smov 96   ;;  %vm181_vm3 = vcmask 64512  }
   0x7   :  { %v509_v11 = vpack.c.bf16 %v21_v10, %v20_v9  ;;  %v22_v12 = vld [vmem:[%s696_s1 + $0x30] sm:$0xff]  ;;  %v23_v13 = vld [vmem:[%s696_s1 + $0x38] sm:$0xff]  ;;  %v24_v15 = vld [vmem:[%s696_s1 + $0x40] sm:$0xff] }
   0x8   :  { %v513_v14 = vpack.c.bf16 %v23_v13, %v22_v12  ;;  %v25_v16 = vld [vmem:[%s696_s1 + $0x48] sm:$0xff]  ;;  %v26_v18 = vld [vmem:[%s696_s1 + $0x50] sm:$0xff]  ;;  %v27_v19 = vld [vmem:[%s696_s1 + $0x58] sm:$0xff]  ;;  %s581_s1 = smov [#allocation2]  }
   0x9   :  { %v517_v17 = vpack.c.bf16 %v25_v16, %v24_v15  ;;  %v521_v20 = vpack.c.bf16 %v27_v19, %v26_v18  ;;  %v15_v21 = vld [vmem:[%s695_s0] sm:$0xff]  ;;  %s580_s0 = smov 64  }
   0xa   :  { %v412_v22 = vld [vmem:[%s697_s2] ss:$0 sm:$0xff]  ;;  %s404_s2 = sshll.u32 %s581_s1, 4  ;;  %s405_s2 = int_to_ptr.vmem [resolvable:$true] %s404_s2 }
   0xb   :  { %s552_s14 = scalar_lea.vmem %s405_s2, 128  ;;  %p557_p1 = scmp.lt.s32.totalorder %s405_s2, %s405_s2 }
   0xc   :  { %507 = vmatpush3.bf16.xpose.msk.msra.mxu0 %vm611_vm1, %v505_v8  ;;  %p553_p0 = scmp.ne.s32.totalorder %s405_s2, %s552_s14  ;;  %p558_p2 = scmp.lt.s32.totalorder %s552_s14, %s552_s14 }
   0xd   :  { %508 = vmatprep.subr.bf16.mxu0 %v576_v2 }
   0xe   :  { %p559_p3 = por %p558_p2, %p557_p1 }
  0x10   :  { %p560_p4 = pnand %p559_p3, %p553_p0 }
  0x14   :  { %511 = vmatpush3.bf16.xpose.msk.msra.mxu0 %vm611_vm1, %v509_v11 }
  0x15   :  { %512 = vmatprep.subr.bf16.mxu0 %v576_v2 }
  0x1c   :  { %515 = vmatpush3.bf16.xpose.msk.msra.mxu0 %vm611_vm1, %v513_v14 }
  0x1d   :  { %516 = vmatprep.subr.bf16.mxu0 %v576_v2 }
  0x24   :  { %519 = vmatpush3.bf16.xpose.msk.msra.mxu0 %vm611_vm1, %v517_v17 }
  0x25   :  { %520 = vmatprep.subr.bf16.mxu0 %v576_v2 }
  0x2c   :  { %523 = vmatpush3.bf16.xpose.msk.msra.mxu0 %vm611_vm1, %v521_v20 }
  0x33   :  { %479 = vmatmul.mubr.msk.f32.vlgmr.msra.gmra.mrb[0].mxu0 %vm35_vm0, %v15_v21 }
 0x106   :  { %v141_v23 = vpop.f32.mrb[0].mxu0 }
 0x107   :  { %v142_v24 = vadd.f32 %v412_v22, %v141_v23  ;;  %v480_v25 = vpop.f32.mrb[1].mxu0 }
 0x109   :  { %178 = vrot.lane.b32.xlu0 %v142_v24, %s579_s13 }
 0x127   :  { %145 = vxpose.xlu0.b32.start.end [1/1] (short) (narrow) %v142_v24, 32 }
 0x17b   :  { %v179_v26 = vpop.permute.xlu0 %178 }
 0x17c   :  { %481 = vmatprep.subr.mxu1 %v179_v26 }
 0x17d   :  { %482 = vmatpush3.msra.mxu1 %v179_v26 }
 0x17e   :  { %524 = vmatprep.subr.bf16.mxu1 %v576_v2 }
 0x1a7   :  { %v161_v27 = vpop.trf.xlu0 }
 0x1a8   :  { %483 = vmatprep.mubr.msk.f32.mxu1 %vm181_vm3, %v161_v27 }
 0x1ab   :  { %v162_v28 = vpop.trf.xlu0 }
 0x1ac   :  { %484 = vmatmul.mubr.msk.f32.vlgmr.msra.gmra.mrb[0].mxu1 %vm181_vm3, %v162_v28 }
 0x1af   :  { %v163_v29 = vpop.trf.xlu0 }
 0x1b0   :  { %486 = vmatprep.mubr.msk.f32.mxu1 %vm181_vm3, %v163_v29 }
 0x1b3   :  { %v164_v30 = vpop.trf.xlu0 }
 0x1b4   :  { %487 = vmatmul.mubr.msk.f32.gmra.mrb[2].mxu1 %vm181_vm3, %v164_v30 }
 0x1b5   :  { %497 = vmatprep.mubr.msk.f32.mxu1 %vm577_vm2, %v578_v5 }
 0x27f   :  { %v485_v31 = vpop.f32.mrb[0].mxu1 }
 0x280   :  { %v260_v32 = vpop.f32.mrb[1].mxu1  ;;  %v282_v33 = vsel %vm35_vm0, %v485_v31, -inf }
 0x281   :  { %283 = vmax.xlane.f32.xlu1 %v282_v33  ;;  %v279_v34 = vsel %vm35_vm0, %v260_v32, -inf }
 0x285   :  { %280 = vmax.xlane.f32.xlu1 %v279_v34 }
 0x287   :  { %v488_v35 = vpop.f32.mrb[2].mxu1 }
 0x288   :  { %v270_v36 = vpop.f32.mrb[3].mxu1  ;;  %v288_v38 = vsel %vm35_vm0, %v488_v35, -inf }
 0x289   :  { %v285_v37 = vsel %vm35_vm0, %v270_v36, -inf }
 0x28a   :  { %286 = vmax.xlane.f32.xlu1 %v285_v37 }
 0x28e   :  { %289 = vmax.xlane.f32.xlu1 %v288_v38 }
 0x30e   :  { %v284_v39 = vpop.xlane.xlu1 %283 }
 0x30f   :  { %v292_v40 = vsub.f32 %v485_v31, %v284_v39 }
 0x311   :  { %v297_v41 = vmul.f32 1.442695, %v292_v40 }
 0x312   :  { %v281_v42 = vpop.xlane.xlu1 %280 }
 0x313   :  { %536 = vpow2.f32 %v297_v41  ;;  %v291_v43 = vsub.f32 %v260_v32, %v281_v42 }
 0x315   :  { %v295_v44 = vmul.f32 1.442695, %v291_v43 }
 0x317   :  { %538 = vpow2.f32 %v295_v44  ;;  %v287_v45 = vpop.xlane.xlu1 %286 }
 0x318   :  { %v293_v46 = vsub.f32 %v270_v36, %v287_v45 }
 0x31a   :  { %v299_v50 = vmul.f32 1.442695, %v293_v46 }
 0x31b   :  { %v290_v47 = vpop.xlane.xlu1 %289 }
 0x31c   :  { %v294_v48 = vsub.f32 %v488_v35, %v290_v47 }
 0x31d   :  { %v537_v49 = vpop.eup %536 }
 0x31e   :  { %v301_v51 = vmul.f32 1.442695, %v294_v48  ;;  %v306_v52 = vsel %vm35_vm0, %v537_v49, 0.0 }
 0x31f   :  { %307 = vadd.xlane.f32.xlu1 %v306_v52 }
 0x320   :  { %540 = vpow2.f32 %v301_v51 }
 0x321   :  { %v539_v53 = vpop.eup %538  ;;  %542 = vpow2.f32 %v299_v50 }
 0x322   :  { %v303_v54 = vsel %vm35_vm0, %v539_v53, 0.0 }
 0x323   :  { %304 = vadd.xlane.f32.xlu1 %v303_v54 }
 0x32a   :  { %v541_v55 = vpop.eup %540 }
 0x32b   :  { %v312_v56 = vsel %vm35_vm0, %v541_v55, 0.0  ;;  %v543_v57 = vpop.eup %542 }
 0x32c   :  { %313 = vadd.xlane.f32.xlu1 %v312_v56  ;;  %v309_v58 = vsel %vm35_vm0, %v543_v57, 0.0 }
 0x330   :  { %310 = vadd.xlane.f32.xlu1 %v309_v58 }
 0x341   :  { %323 = vrot.lane.b32.xlu1 %v142_v24, %s580_s0 }
 0x3ac   :  { %v308_v59 = vpop.xlane.xlu1 %307 }
 0x3ad   :  { %544 = vrcp.f32 %v308_v59 }
 0x3b0   :  { %v305_v60 = vpop.xlane.xlu1 %304 }
 0x3b1   :  { %546 = vrcp.f32 %v305_v60 }
 0x3b7   :  { %v545_v61 = vpop.eup %544 }
 0x3b8   :  { %v320_v1 = vmul.f32 %v545_v61, %v537_v49 }
 0x3b9   :  { %v314_v62 = vpop.xlane.xlu1 %313 }
 0x3ba   :  { %548 = vrcp.f32 %v314_v62 }
 0x3bb   :  { %v547_v63 = vpop.eup %546 }
 0x3bc   :  { %v319_v0 = vmul.f32 %v547_v63, %v539_v53 }
 0x3bd   :  { %v311_v3 = vpop.xlane.xlu1 %310 }
 0x3be   :  { %550 = vrcp.f32 %v311_v3  ;;  %v525_v4 = vpack.c.bf16 %v320_v1, %v319_v0 }
 0x3c0   :  { %526 = vmatpush3.bf16.msra.mxu1 %v525_v4 }
 0x3c1   :  { %527 = vmatprep.subr.bf16.mxu1 %v576_v2  ;;  %v324_v10 = vpop.permute.xlu1 %323 }
 0x3c4   :  { %v549_v5 = vpop.eup %548 }
 0x3c5   :  { %v322_v8 = vmul.f32 %v549_v5, %v541_v55 }
 0x3c8   :  { %v551_v6 = vpop.eup %550 }
 0x3c9   :  { %v321_v7 = vmul.f32 %v551_v6, %v543_v57 }
 0x3cb   :  { %v528_v9 = vpack.c.bf16 %v322_v8, %v321_v7 }
 0x3cd   :  { %529 = vmatpush3.bf16.msra.mxu1 %v528_v9 }
 0x3d0   :  { %498 = vmatmul.mubr.msk.f32.vlgmr.msra.gmra.mrb[4].mxu1 %vm35_vm0, %v324_v10 }
 0x4a3   :  { %v393_v11 = vpop.f32.mrb[4].mxu1 }
 0x4a4   :  { %397 = vst.msk [vmem:[#allocation2] sm:$0xff] %vm35_vm0, %v393_v11  ;;  %v499_v12 = vpop.f32.mrb[5].mxu1 }
 0x4a5   :  { %563 = shalt.err (!%p560_p4)
}
 0x4a6   :  { %s564_s17 = scalar_lea.hbm %s698_s3, 128 }
 0x4a7   :  { %p565_p5 = scmp.ne.s32.totalorder %s698_s3, %s564_s17  ;;  %p568_p6 = scmp.lt.u32.totalorder %s564_s17, %s698_s3 }
 0x4a9   :  { %p570_p7 = pnand %p568_p6, %p565_p5 }
 0x4ab   :  { %573 = shalt.err (!%p570_p7)
}
 0x4ac   :  { %407 = dma.vmem_to_hbm [thread:$0]  %s405_s2, 128, %s698_s3, [#allocation3]  }
 0x4ad   :  { %574 = dma.done.wait [#allocation3], 128  }
 0x4ae   :  { %575 = vsyncadd [#allocation3], 4294967168 }
 0x4af   :  { %411 = vsyncpa [#allocation3], 1 }

</bundles_post_ra>
